<compile_context>
chip_gen: v7x
topology: tpu7x:2x2x1
jax: 0.10.0
libtpu: 0.0.40
codegen_flags: <defaults>
</compile_context>

<pallas_src>
import functools

import jax
import jax.numpy as jnp
from jax.experimental import pallas as pl
from jax.experimental.pallas import tpu as pltpu

_LANE = 128     # lane width (last dim)
_SUBLANE = 8    # sublane width (second-to-last dim)


def _round_up(n, m):
    return ((n + m - 1) // m) * m


def _num_tensorcores():
    """Best-effort TensorCore count (v7x has 2). Safe default of 2: the extra
    grid step costs ~0.35 us on single-TC v5e/v6e, negligible here."""
    try:
        info = pltpu.get_tpu_info()
        for name in ("num_tensorcores", "tensorcores_per_chip", "num_cores",
                     "core_count"):
            n = getattr(info, name, None)
            if isinstance(n, int) and n > 0:
                return n
    except Exception:
        pass
    return 2


def actor_kernel(x_ref, w1_ref, b1_ref, w2_ref, b2_ref,
                 w3_ref, b3_ref, w4_ref, b4_ref, o_ref):
    # Four MXU matmuls (f32 accumulation) + VPU relu/bias + EUP tanh, fused
    # over one batch block. Dot inputs are cast to the weight dtype so the
    # same kernel serves both the f32 and bf16 weight paths (cast is a no-op
    # when weights are f32).
    h = jnp.dot(x_ref[...].astype(w1_ref.dtype), w1_ref[...],
                preferred_element_type=jnp.float32) + b1_ref[...]
    h = jnp.maximum(h, 0.0)
    h = jnp.dot(h.astype(w2_ref.dtype), w2_ref[...],
                preferred_element_type=jnp.float32) + b2_ref[...]
    h = jnp.maximum(h, 0.0)
    h = jnp.dot(h.astype(w3_ref.dtype), w3_ref[...],
                preferred_element_type=jnp.float32) + b3_ref[...]
    h = jnp.maximum(h, 0.0)
    y = jnp.dot(h.astype(w4_ref.dtype), w4_ref[...],
                preferred_element_type=jnp.float32) + b4_ref[...]
    o_ref[...] = jnp.tanh(y).astype(o_ref.dtype)


def _pad2(a, rows, cols):
    return jnp.zeros((rows, cols), a.dtype).at[:a.shape[0], :a.shape[1]].set(a)


def prepare_params(params, *, dtype=jnp.float32):
    """Pad weights/biases once (out-feature dims rounded to 128, lane-dense)
    and optionally cast matmul weights to bf16. Call at init / after a
    parameter update — NOT inside the per-step path. Zero padding keeps valid
    outputs bit-exact. Returns (padded_params, action_dim)."""
    state_dim = params["w1"].shape[0]
    mid_dim = params["w1"].shape[1]
    action_dim = params["w4"].shape[1]
    md_p = _round_up(mid_dim, _LANE)
    ad_p = _round_up(action_dim, _LANE)
    padded = {
        # K of the first layer stays at state_dim: no input padding needed.
        "w1": _pad2(params["w1"], state_dim, md_p).astype(dtype),
        "b1": _pad2(params["b1"], 1, md_p).astype(jnp.float32),
        "w2": _pad2(params["w2"], md_p, md_p).astype(dtype),
        "b2": _pad2(params["b2"], 1, md_p).astype(jnp.float32),
        "w3": _pad2(params["w3"], md_p, md_p).astype(dtype),
        "b3": _pad2(params["b3"], 1, md_p).astype(jnp.float32),
        "w4": _pad2(params["w4"], md_p, ad_p).astype(dtype),
        "b4": _pad2(params["b4"], 1, ad_p).astype(jnp.float32),
    }
    return padded, action_dim


@functools.partial(jax.jit, static_argnames=("action_dim", "batch_block"))
def actor_forward(state, padded_params, *, action_dim, batch_block=512):
    """state: [B, state_dim] f32. padded_params: output of prepare_params()."""
    p = padded_params
    w1, b1, w2, b2, w3, b3, w4, b4 = (p["w1"], p["b1"], p["w2"], p["b2"],
                                      p["w3"], p["b3"], p["w4"], p["b4"])
    B, state_dim = state.shape
    md_p = w1.shape[1]
    ad_p = w4.shape[1]
    wbytes = w1.dtype.itemsize

    # Batch block: aim for >= num-TC grid steps (megacore sharding on v7x)
    # while keeping blocks as large as possible (<= batch_block) to amortize
    # per-grid-step overhead on single-TC chips.
    n_tc = _num_tensorcores()
    tb = max(_SUBLANE, min(batch_block, _round_up(pl.cdiv(B, n_tc), _SUBLANE)))
    grid = (pl.cdiv(B, tb),)

    const2 = lambda i: (0, 0)
    # Weights/biases: constant index_map -> fetched once, VMEM-resident across
    # batch blocks. Single-buffer them only when they are big enough for the
    # redundant second buffer to matter (halves weight VMEM at md_p >= 1024).
    wkw = {"pipeline_mode": pl.Buffered(1)} if md_p >= 1024 else {}
    in_specs = [
        pl.BlockSpec((tb, state_dim), lambda i: (i, 0)),          # x: batch-tiled
        pl.BlockSpec((state_dim, md_p), const2, **wkw),
        pl.BlockSpec((1, md_p), const2, **wkw),
        pl.BlockSpec((md_p, md_p), const2, **wkw),
        pl.BlockSpec((1, md_p), const2, **wkw),
        pl.BlockSpec((md_p, md_p), const2, **wkw),
        pl.BlockSpec((1, md_p), const2, **wkw),
        pl.BlockSpec((md_p, ad_p), const2, **wkw),
        pl.BlockSpec((1, ad_p), const2, **wkw),
    ]
    out_spec = pl.BlockSpec((tb, ad_p), lambda i: (i, 0))

    weight_elems = state_dim * md_p + 2 * md_p * md_p + md_p * ad_p
    bias_elems = 3 * md_p + ad_p
    flops = 2 * B * weight_elems
    bytes_accessed = (4 * B * (state_dim + ad_p)
                      + wbytes * weight_elems + 4 * bias_elems)

    # Rough VMEM footprint: resident weights (x buffer count) + double-buffered
    # x/out blocks + f32 activation temporaries. Only raise the scoped limit
    # when the default would be exceeded.
    wbuf = 1 if md_p >= 1024 else 2
    vmem_est = (wbuf * (wbytes * weight_elems + 4 * bias_elems)
                + 2 * 4 * tb * (state_dim + ad_p)
                + 2 * 4 * tb * md_p)
    vmem_limit = int(min(vmem_est * 5 // 4, 100 << 20)) if vmem_est > (24 << 20) else None
    # TODO(synk): add a K-tiled reduction grid axis (accumulator + pl.when) for
    # mid_dim so large that even bf16 resident weights exceed v7x's 64 MiB VMEM.

    out_padded = pl.pallas_call(
        actor_kernel,
        out_shape=jax.ShapeDtypeStruct((B, ad_p), jnp.float32),
        grid=grid,
        in_specs=in_specs,
        out_specs=out_spec,
        compiler_params=pltpu.CompilerParams(
            dimension_semantics=("parallel",),
            vmem_limit_bytes=vmem_limit,
        ),
        cost_estimate=pl.CostEstimate(
            flops=flops,
            transcendentals=B * ad_p,
            bytes_accessed=bytes_accessed,
        ),
    )(state, w1, b1, w2, b2, w3, b3, w4, b4)

    # Only the action-dim lane padding remains to be sliced off.
    return out_padded[:, :action_dim]


def init_actor_params(key, state_dim, mid_dim, action_dim):
    """Deterministic init mimicking torch.nn.Linear default (U[-1/sqrt(fan_in), +])."""
    dims = [(state_dim, mid_dim), (mid_dim, mid_dim),
            (mid_dim, mid_dim), (mid_dim, action_dim)]
    params = {}
    for i, (fan_in, fan_out) in enumerate(dims, start=1):
        key, kw, kb = jax.random.split(key, 3)
        bound = 1.0 / jnp.sqrt(jnp.float32(fan_in))
        # Stored as (in, out) == transposed PyTorch layout.
        params[f"w{i}"] = jax.random.uniform(
            kw, (fan_in, fan_out), jnp.float32, minval=-bound, maxval=bound)
        params[f"b{i}"] = jax.random.uniform(
            kb, (1, fan_out), jnp.float32, minval=-bound, maxval=bound)
    return params


def actor_forward_ref(state, params):
    h = state
    h = jnp.maximum(h @ params["w1"] + params["b1"], 0.0)
    h = jnp.maximum(h @ params["w2"] + params["b2"], 0.0)
    h = jnp.maximum(h @ params["w3"] + params["b3"], 0.0)
    return jnp.tanh(h @ params["w4"] + params["b4"])


if __name__ == "__main__":
    key = jax.random.PRNGKey(0)
    batch, state_dim, mid_dim, action_dim = 8, 8, 32, 4

    kp, kx, kx2 = jax.random.split(key, 3)
    raw_params = init_actor_params(kp, state_dim, mid_dim, action_dim)
    padded_f32, adim = prepare_params(raw_params)      # pad ONCE, outside the step

    # Small-batch check (single grid step).
    state = jax.random.normal(kx, (batch, state_dim), jnp.float32)
    out = jax.block_until_ready(actor_forward(state, padded_f32, action_dim=adim))
    ref = actor_forward_ref(state, raw_params)
    assert out.shape == (batch, action_dim)
    assert jnp.allclose(out, ref, atol=1e-5, rtol=1e-5), "mismatch (small batch, f32)"

    # Larger, non-multiple batch: exercises the multi-step parallel batch grid
    # and the partial trailing block (no input copy; OOB rows never stored).
    big_batch = 300
    state_big = jax.random.normal(kx2, (big_batch, state_dim), jnp.float32)
    out_big = jax.block_until_ready(
        actor_forward(state_big, padded_f32, action_dim=adim, batch_block=128))
    ref_big = actor_forward_ref(state_big, raw_params)
    assert out_big.shape == (big_batch, action_dim)
    assert jnp.allclose(out_big, ref_big, atol=1e-5, rtol=1e-5), "mismatch (gridded batch, f32)"

    # bf16 weight path (f32 MXU accumulation) with looser tolerance.
    padded_bf16, adim_bf16 = prepare_params(raw_params, dtype=jnp.bfloat16)
    out_bf16 = jax.block_until_ready(
        actor_forward(state_big, padded_bf16, action_dim=adim_bf16, batch_block=128))
    assert out_bf16.shape == (big_batch, action_dim)
    assert jnp.allclose(out_bf16, ref_big, atol=5e-2), "mismatch (bf16 weights)"

    print("KERNEL_OK")
</pallas_src>

<mosaic_0001>
module attributes {stable_mosaic.version = 11 : i64} {
  func.func @actor_kernel(%arg0: i32, %arg1: memref<8x8xf32, #tpu.memory_space<vmem>>, %arg2: memref<8x128xf32, #tpu.memory_space<vmem>>, %arg3: memref<1x128xf32, #tpu.memory_space<vmem>>, %arg4: memref<128x128xf32, #tpu.memory_space<vmem>>, %arg5: memref<1x128xf32, #tpu.memory_space<vmem>>, %arg6: memref<128x128xf32, #tpu.memory_space<vmem>>, %arg7: memref<1x128xf32, #tpu.memory_space<vmem>>, %arg8: memref<128x128xf32, #tpu.memory_space<vmem>>, %arg9: memref<1x128xf32, #tpu.memory_space<vmem>>, %arg10: memref<8x128xf32, #tpu.memory_space<vmem>>) attributes {dimension_semantics = [#tpu.dimension_semantics<parallel>], iteration_bounds = array<i64: 1>, scalar_prefetch = 0 : i64, scratch_operands = 0 : i64, tpu.core_type = #tpu.core_type<tc>, window_params = [{transform_indices = @transform_0, window_bounds = array<i64: 8, 8>}, {pipeline_mode = #tpu.pipeline_mode<synchronous>, transform_indices = @transform_1, window_bounds = array<i64: 8, 128>}, {pipeline_mode = #tpu.pipeline_mode<synchronous>, transform_indices = @transform_2, window_bounds = array<i64: 1, 128>}, {pipeline_mode = #tpu.pipeline_mode<synchronous>, transform_indices = @transform_3, window_bounds = array<i64: 128, 128>}, {pipeline_mode = #tpu.pipeline_mode<synchronous>, transform_indices = @transform_4, window_bounds = array<i64: 1, 128>}, {pipeline_mode = #tpu.pipeline_mode<synchronous>, transform_indices = @transform_5, window_bounds = array<i64: 128, 128>}, {pipeline_mode = #tpu.pipeline_mode<synchronous>, transform_indices = @transform_6, window_bounds = array<i64: 1, 128>}, {pipeline_mode = #tpu.pipeline_mode<synchronous>, transform_indices = @transform_7, window_bounds = array<i64: 128, 128>}, {pipeline_mode = #tpu.pipeline_mode<synchronous>, transform_indices = @transform_8, window_bounds = array<i64: 1, 128>}, {transform_indices = @transform_9, window_bounds = array<i64: 8, 128>}]} {
    %c0 = arith.constant 0 : index
    %c0_0 = arith.constant 0 : index
    %0 = vector.load %arg1[%c0, %c0_0] : memref<8x8xf32, #tpu.memory_space<vmem>>, vector<8x8xf32>
    %c0_1 = arith.constant 0 : index
    %c0_2 = arith.constant 0 : index
    %1 = vector.load %arg2[%c0_1, %c0_2] : memref<8x128xf32, #tpu.memory_space<vmem>>, vector<8x128xf32>
    %cst = arith.constant dense<0.000000e+00> : vector<8x128xf32>
    %2 = tpu.matmul %0, %1, %cst {dimension_numbers = #tpu.dot_dimension_numbers<[1], [0], [0], [1], [0, 0, 1, 1], [], []>} : vector<8x8xf32>, vector<8x128xf32>, vector<8x128xf32> -> vector<8x128xf32>
    %c0_3 = arith.constant 0 : index
    %c0_4 = arith.constant 0 : index
    %3 = vector.load %arg3[%c0_3, %c0_4] : memref<1x128xf32, #tpu.memory_space<vmem>>, vector<1x128xf32>
    %4 = vector.broadcast %3 : vector<1x128xf32> to vector<8x128xf32>
    %5 = arith.addf %2, %4 : vector<8x128xf32>
    %cst_5 = arith.constant 0.000000e+00 : f32
    %6 = vector.broadcast %cst_5 : f32 to vector<8x128xf32>
    %7 = arith.maximumf %5, %6 : vector<8x128xf32>
    %c0_6 = arith.constant 0 : index
    %c0_7 = arith.constant 0 : index
    %8 = vector.load %arg4[%c0_6, %c0_7] : memref<128x128xf32, #tpu.memory_space<vmem>>, vector<128x128xf32>
    %cst_8 = arith.constant dense<0.000000e+00> : vector<8x128xf32>
    %9 = tpu.matmul %7, %8, %cst_8 {dimension_numbers = #tpu.dot_dimension_numbers<[1], [0], [0], [1], [0, 0, 1, 1], [], []>} : vector<8x128xf32>, vector<128x128xf32>, vector<8x128xf32> -> vector<8x128xf32>
    %c0_9 = arith.constant 0 : index
    %c0_10 = arith.constant 0 : index
    %10 = vector.load %arg5[%c0_9, %c0_10] : memref<1x128xf32, #tpu.memory_space<vmem>>, vector<1x128xf32>
    %11 = vector.broadcast %10 : vector<1x128xf32> to vector<8x128xf32>
    %12 = arith.addf %9, %11 : vector<8x128xf32>
    %cst_11 = arith.constant 0.000000e+00 : f32
    %13 = vector.broadcast %cst_11 : f32 to vector<8x128xf32>
    %14 = arith.maximumf %12, %13 : vector<8x128xf32>
    %c0_12 = arith.constant 0 : index
    %c0_13 = arith.constant 0 : index
    %15 = vector.load %arg6[%c0_12, %c0_13] : memref<128x128xf32, #tpu.memory_space<vmem>>, vector<128x128xf32>
    %cst_14 = arith.constant dense<0.000000e+00> : vector<8x128xf32>
    %16 = tpu.matmul %14, %15, %cst_14 {dimension_numbers = #tpu.dot_dimension_numbers<[1], [0], [0], [1], [0, 0, 1, 1], [], []>} : vector<8x128xf32>, vector<128x128xf32>, vector<8x128xf32> -> vector<8x128xf32>
    %c0_15 = arith.constant 0 : index
    %c0_16 = arith.constant 0 : index
    %17 = vector.load %arg7[%c0_15, %c0_16] : memref<1x128xf32, #tpu.memory_space<vmem>>, vector<1x128xf32>
    %18 = vector.broadcast %17 : vector<1x128xf32> to vector<8x128xf32>
    %19 = arith.addf %16, %18 : vector<8x128xf32>
    %cst_17 = arith.constant 0.000000e+00 : f32
    %20 = vector.broadcast %cst_17 : f32 to vector<8x128xf32>
    %21 = arith.maximumf %19, %20 : vector<8x128xf32>
    %c0_18 = arith.constant 0 : index
    %c0_19 = arith.constant 0 : index
    %22 = vector.load %arg8[%c0_18, %c0_19] : memref<128x128xf32, #tpu.memory_space<vmem>>, vector<128x128xf32>
    %cst_20 = arith.constant dense<0.000000e+00> : vector<8x128xf32>
    %23 = tpu.matmul %21, %22, %cst_20 {dimension_numbers = #tpu.dot_dimension_numbers<[1], [0], [0], [1], [0, 0, 1, 1], [], []>} : vector<8x128xf32>, vector<128x128xf32>, vector<8x128xf32> -> vector<8x128xf32>
    %c0_21 = arith.constant 0 : index
    %c0_22 = arith.constant 0 : index
    %24 = vector.load %arg9[%c0_21, %c0_22] : memref<1x128xf32, #tpu.memory_space<vmem>>, vector<1x128xf32>
    %25 = vector.broadcast %24 : vector<1x128xf32> to vector<8x128xf32>
    %26 = arith.addf %23, %25 : vector<8x128xf32>
    %27 = math.tanh %26 : vector<8x128xf32>
    %c0_23 = arith.constant 0 : index
    %c0_24 = arith.constant 0 : index
    %28 = vector.load %arg10[%c0_23, %c0_24] : memref<8x128xf32, #tpu.memory_space<vmem>>, vector<8x128xf32>
    tpu.vector_store %arg10[%c0_23, %c0_24], %27 {strides = array<i32>} : memref<8x128xf32, #tpu.memory_space<vmem>>, vector<8x128xf32>,
    return
  }
  func.func @transform_0(%arg0: i32) -> (i32, i32) {
    %c0_i32 = arith.constant 0 : i32
    %c0_i32_0 = arith.constant 0 : i32
    return %arg0, %c0_i32 : i32, i32
  }
  func.func @transform_1(%arg0: i32) -> (i32, i32) {
    %c0_i32 = arith.constant 0 : i32
    %c0_i32_0 = arith.constant 0 : i32
    %c0_i32_1 = arith.constant 0 : i32
    return %c0_i32, %c0_i32_0 : i32, i32
  }
  func.func @transform_2(%arg0: i32) -> (i32, i32) {
    %c0_i32 = arith.constant 0 : i32
    %c0_i32_0 = arith.constant 0 : i32
    %c0_i32_1 = arith.constant 0 : i32
    return %c0_i32, %c0_i32_0 : i32, i32
  }
  func.func @transform_3(%arg0: i32) -> (i32, i32) {
    %c0_i32 = arith.constant 0 : i32
    %c0_i32_0 = arith.constant 0 : i32
    %c0_i32_1 = arith.constant 0 : i32
    return %c0_i32, %c0_i32_0 : i32, i32
  }
  func.func @transform_4(%arg0: i32) -> (i32, i32) {
    %c0_i32 = arith.constant 0 : i32
    %c0_i32_0 = arith.constant 0 : i32
    %c0_i32_1 = arith.constant 0 : i32
    return %c0_i32, %c0_i32_0 : i32, i32
  }
  func.func @transform_5(%arg0: i32) -> (i32, i32) {
    %c0_i32 = arith.constant 0 : i32
    %c0_i32_0 = arith.constant 0 : i32
    %c0_i32_1 = arith.constant 0 : i32
    return %c0_i32, %c0_i32_0 : i32, i32
  }
  func.func @transform_6(%arg0: i32) -> (i32, i32) {
    %c0_i32 = arith.constant 0 : i32
    %c0_i32_0 = arith.constant 0 : i32
    %c0_i32_1 = arith.constant 0 : i32
    return %c0_i32, %c0_i32_0 : i32, i32
  }
  func.func @transform_7(%arg0: i32) -> (i32, i32) {
    %c0_i32 = arith.constant 0 : i32
    %c0_i32_0 = arith.constant 0 : i32
    %c0_i32_1 = arith.constant 0 : i32
    return %c0_i32, %c0_i32_0 : i32, i32
  }
  func.func @transform_8(%arg0: i32) -> (i32, i32) {
    %c0_i32 = arith.constant 0 : i32
    %c0_i32_0 = arith.constant 0 : i32
    %c0_i32_1 = arith.constant 0 : i32
    return %c0_i32, %c0_i32_0 : i32, i32
  }
  func.func @transform_9(%arg0: i32) -> (i32, i32) {
    %c0_i32 = arith.constant 0 : i32
    %c0_i32_0 = arith.constant 0 : i32
    return %arg0, %c0_i32 : i32, i32
  }
}

</mosaic_0001>

<bundles_post_ra>
// kernel: actor_forward.1
= control target key start
LH: loop header
LB: loop body
LE: loop exit
PB: predicated region body
PF: predicated region fallthrough
CT: control target
= control target key end

     0   :  { %14 = vsyncpa [#allocation3], 0  ;;  %s971_s0 = inlined_call_operand.hbm [shape: f32[8,8], index: 0, kind: input, shape index: {}]   ;;  %s972_s1 = inlined_call_operand.vmem [shape: f32[8,128], index: 1, kind: input, shape index: {}]   ;;  %s973_s2 = inlined_call_operand.vmem [shape: f32[1,128], index: 2, kind: input, shape index: {}]   ;;  %s974_s3 = inlined_call_operand.hbm [shape: f32[128,128], index: 3, kind: input, shape index: {}]   ;;  %s975_s4 = inlined_call_operand.vmem [shape: f32[1,128], index: 4, kind: input, shape index: {}]   ;;  %s976_s5 = inlined_call_operand.hbm [shape: f32[128,128], index: 5, kind: input, shape index: {}]   ;;  %s977_s6 = inlined_call_operand.vmem [shape: f32[1,128], index: 6, kind: input, shape index: {}]   ;;  %s978_s7 = inlined_call_operand.hbm [shape: f32[128,128], index: 7, kind: input, shape index: {}]   ;;  %s979_s8 = inlined_call_operand.vmem [shape: f32[1,128], index: 8, kind: input, shape index: {}]   ;;  %s980_s9 = inlined_call_operand.vmem [shape: f32[8,128], index: 9, kind: output, shape index: {}]  }
   0x1   :  { %15 = vsyncpa [#allocation5], 0 }
   0x2   :  { %16 = vsyncpa [#allocation8], 0  ;;  %s804_s30 = smov [#allocation4]   ;;  %s710_s13 = scalar_lea.hbm %s974_s3, 2048 }
   0x3   :  { %s36_s10 = sshll.u32 %s804_s30, 4  ;;  %p711_p0 = scmp.ne.s32.totalorder %s974_s3, %s710_s13  ;;  %s37_s10 = int_to_ptr.vmem [resolvable:$true] %s36_s10 }
   0x4   :  { %p714_p1 = scmp.lt.u32.totalorder %s710_s13, %s974_s3 }
   0x6   :  { %p716_p2 = pnand %p714_p1, %p711_p0 }
   0x8   :  { %719 = shalt.err (!%p716_p2)
}
   0x9   :  { %s720_s18 = scalar_lea.vmem %s37_s10, 2048  ;;  %p725_p4 = scmp.lt.s32.totalorder %s37_s10, %s37_s10 }
   0xa   :  { %p721_p3 = scmp.ne.s32.totalorder %s37_s10, %s720_s18  ;;  %p726_p5 = scmp.lt.s32.totalorder %s720_s18, %s720_s18 }
   0xc   :  { %p727_p6 = por %p726_p5, %p725_p4 }
   0xe   :  { %p728_p7 = pnand %p727_p6, %p721_p3 }
  0x10   :  { %731 = shalt.err (!%p728_p7)
}
  0x11   :  { %s805_s19 = smov 128   ;;  %s806_s20 = smov 8  }
  0x12   :  { %42 = dma.hbm_to_vmem [thread:$0]  %s974_s3, 2048, %s37_s10, [#allocation5], %s805_s19, %s805_s19, %s806_s20  }
  0x13   :  { %s807_s23 = smov [#allocation2]   ;;  %s808_s25 = smov [#allocation6]  }
  0x14   :  { %s23_s24 = sshll.u32 %s807_s23, 4  ;;  %s50_s26 = sshll.u32 %s808_s25, 4  ;;  %s24_s24 = int_to_ptr.vmem [resolvable:$true] %s23_s24  ;;  %s51_s26 = int_to_ptr.vmem [resolvable:$true] %s50_s26 }
  0x15   :  { %s732_s29 = scalar_lea.hbm %s971_s0, 128 }
  0x16   :  { %p733_p8 = scmp.ne.s32.totalorder %s971_s0, %s732_s29  ;;  %p736_p9 = scmp.lt.u32.totalorder %s732_s29, %s971_s0 }
  0x18   :  { %p738_p10 = pnand %p736_p9, %p733_p8 }
  0x1a   :  { %741 = shalt.err (!%p738_p10)
}
  0x1b   :  { %s742_s3 = scalar_lea.vmem %s24_s24, 128  ;;  %p747_p12 = scmp.lt.s32.totalorder %s24_s24, %s24_s24 }
  0x1c   :  { %p743_p11 = scmp.ne.s32.totalorder %s24_s24, %s742_s3  ;;  %p748_p13 = scmp.lt.s32.totalorder %s742_s3, %s742_s3 }
  0x1e   :  { %p749_p0 = por %p748_p13, %p747_p12 }
  0x20   :  { %p750_p1 = pnand %p749_p0, %p743_p11 }
  0x22   :  { %753 = shalt.err (!%p750_p1)
}
  0x23   :  { %26 = dma.hbm_to_vmem [thread:$0]  %s971_s0, 128, %s24_s24, [#allocation3]  }
  0x24   :  { %s754_s17 = scalar_lea.hbm %s976_s5, 2048 }
  0x25   :  { %p755_p2 = scmp.ne.s32.totalorder %s976_s5, %s754_s17  ;;  %p758_p3 = scmp.lt.u32.totalorder %s754_s17, %s976_s5 }
  0x27   :  { %p760_p4 = pnand %p758_p3, %p755_p2 }
  0x29   :  { %763 = shalt.err (!%p760_p4)
}
  0x2a   :  { %s764_s25 = scalar_lea.vmem %s51_s26, 2048  ;;  %p769_p6 = scmp.lt.s32.totalorder %s51_s26, %s51_s26 }
  0x2b   :  { %p765_p5 = scmp.ne.s32.totalorder %s51_s26, %s764_s25  ;;  %p770_p7 = scmp.lt.s32.totalorder %s764_s25, %s764_s25 }
  0x2d   :  { %p771_p8 = por %p770_p7, %p769_p6 }
  0x2f   :  { %p772_p9 = pnand %p771_p8, %p765_p5 }
  0x31   :  { %775 = shalt.err (!%p772_p9)
}
  0x32   :  { %56 = dma.hbm_to_vmem [thread:$0]  %s976_s5, 2048, %s51_s26, [#allocation5], %s805_s19, %s805_s19, %s806_s20  }
  0x33   :  { %s809_s27 = smov [#allocation7]   ;;  %s776_s11 = scalar_lea.hbm %s978_s7, 2048 }
  0x34   :  { %s64_s28 = sshll.u32 %s809_s27, 4  ;;  %p777_p10 = scmp.ne.s32.totalorder %s978_s7, %s776_s11  ;;  %s65_s28 = int_to_ptr.vmem [resolvable:$true] %s64_s28 }
  0x35   :  { %p780_p11 = scmp.lt.u32.totalorder %s776_s11, %s978_s7 }
  0x37   :  { %p782_p12 = pnand %p780_p11, %p777_p10 }
  0x39   :  { %785 = shalt.err (!%p782_p12)
}
  0x3a   :  { %s786_s14 = scalar_lea.vmem %s65_s28, 2048  ;;  %p791_p0 = scmp.lt.s32.totalorder %s65_s28, %s65_s28 }
  0x3b   :  { %p787_p13 = scmp.ne.s32.totalorder %s65_s28, %s786_s14  ;;  %p792_p1 = scmp.lt.s32.totalorder %s786_s14, %s786_s14 }
  0x3d   :  { %p793_p2 = por %p792_p1, %p791_p0 }
  0x3f   :  { %p794_p3 = pnand %p793_p2, %p787_p13 }
  0x41   :  { %797 = shalt.err (!%p794_p3)
}
  0x42   :  { %70 = dma.hbm_to_vmem [thread:$0]  %s978_s7, 2048, %s65_s28, [#allocation8], %s805_s19, %s805_s19, %s806_s20  }
  0x43   :  { %798 = dma.done.wait [#allocation3], 128  }
  0x44   :  { %799 = vsyncadd [#allocation3], 4294967168 }
  0x45   :  { %800 = dma.done.wait [#allocation5], 4096  }
  0x46   :  { %801 = vsyncadd [#allocation5], 4294963200 }
  0x47   :  { %802 = dma.done.wait [#allocation8], 2048  }
  0x48   :  { %803 = vsyncadd [#allocation8], 4294965248  ;;  %v810_v0 = vmov 0.0   ;;  %vm811_vm0 = vmmov 0   ;;  %v812_v1 = vmov 0.0|0.0   ;;  %vm94_vm1 = vcmask 64512  }
  0x49   :  { %517 = vmatprep.subr.mxu0 %v810_v0  ;;  %519 = vmatprep.mubr.msk.f32.mxu0 %vm811_vm0, %v810_v0  ;;  %v86_v2 = vld [vmem:[%s972_s1] sm:$0xff]  ;;  %v169_v4 = vld [vmem:[#allocation4] sm:$0xff]  ;;  %v170_v5 = vld [vmem:[#allocation4 + $0x8] sm:$0xff] }
  0x4a   :  { %627 = vmatprep.subr.bf16.mxu1 %v812_v1  ;;  %554 = vmatprep.mubr.msk.f32.mxu1 %vm811_vm0, %v810_v0  ;;  %v85_v3 = vld [vmem:[#allocation2] sm:$0xff]  ;;  %v171_v6 = vld [vmem:[#allocation4 + $0x10] sm:$0xff]  ;;  %v628_v8 = vpack.c.bf16 %v170_v5, %v169_v4  ;;  %v173_v10 = vld [vmem:[#allocation4 + $0x20] sm:$0xff] }
  0x4b   :  { %518 = vmatpush3.msra.mxu0 %v86_v2  ;;  %v172_v7 = vld [vmem:[#allocation4 + $0x18] sm:$0xff]  ;;  %v174_v11 = vld [vmem:[#allocation4 + $0x28] sm:$0xff]  ;;  %v175_v13 = vld [vmem:[#allocation4 + $0x30] sm:$0xff] }
  0x4c   :  { %520 = vmatmul.mubr.msk.f32.vlgmr.msra.gmra.mrb[0].mxu0 %vm94_vm1, %v85_v3  ;;  %651 = vmatprep.subr.bf16.mxu0 %v812_v1  ;;  %v631_v9 = vpack.c.bf16 %v172_v7, %v171_v6  ;;  %v634_v12 = vpack.c.bf16 %v174_v11, %v173_v10  ;;  %v176_v14 = vld [vmem:[#allocation4 + $0x38] sm:$0xff]  ;;  %v177_v16 = vld [vmem:[#allocation4 + $0x40] sm:$0xff]  ;;  %v178_v17 = vld [vmem:[#allocation4 + $0x48] sm:$0xff] }
  0x4d   :  { %589 = vmatprep.mubr.msk.f32.mxu0 %vm811_vm0, %v810_v0  ;;  %629 = vmatpush3.bf16.msra.mxu1 %v628_v8  ;;  %v637_v15 = vpack.c.bf16 %v176_v14, %v175_v13  ;;  %v640_v18 = vpack.c.bf16 %v178_v17, %v177_v16  ;;  %v179_v19 = vld [vmem:[#allocation4 + $0x50] sm:$0xff]  ;;  %v180_v20 = vld [vmem:[#allocation4 + $0x58] sm:$0xff]  ;;  %v181_v22 = vld [vmem:[#allocation4 + $0x60] sm:$0xff] }
  0x4e   :  { %630 = vmatprep.subr.bf16.mxu1 %v812_v1  ;;  %v643_v21 = vpack.c.bf16 %v180_v20, %v179_v19  ;;  %v182_v23 = vld [vmem:[#allocation4 + $0x68] sm:$0xff]  ;;  %v183_v25 = vld [vmem:[#allocation4 + $0x70] sm:$0xff]  ;;  %v184_v26 = vld [vmem:[#allocation4 + $0x78] sm:$0xff] }
  0x4f   :  { %v646_v24 = vpack.c.bf16 %v182_v23, %v181_v22  ;;  %v649_v27 = vpack.c.bf16 %v184_v26, %v183_v25  ;;  %v263_v28 = vld [vmem:[#allocation6] sm:$0xff]  ;;  %v264_v29 = vld [vmem:[#allocation6 + $0x8] sm:$0xff]  ;;  %v265_v30 = vld [vmem:[#allocation6 + $0x10] sm:$0xff] }
  0x50   :  { %v652_v31 = vpack.c.bf16 %v264_v29, %v263_v28  ;;  %v266_v32 = vld [vmem:[#allocation6 + $0x18] sm:$0xff]  ;;  %v267_v34 = vld [vmem:[#allocation6 + $0x20] sm:$0xff]  ;;  %v268_v35 = vld [vmem:[#allocation6 + $0x28] sm:$0xff] }
  0x51   :  { %632 = vmatpush3.bf16.msra.mxu1 %v631_v9  ;;  %v655_v33 = vpack.c.bf16 %v266_v32, %v265_v30  ;;  %v658_v36 = vpack.c.bf16 %v268_v35, %v267_v34  ;;  %v269_v37 = vld [vmem:[#allocation6 + $0x30] sm:$0xff]  ;;  %v270_v38 = vld [vmem:[#allocation6 + $0x38] sm:$0xff]  ;;  %v271_v40 = vld [vmem:[#allocation6 + $0x40] sm:$0xff] }
  0x52   :  { %633 = vmatprep.subr.bf16.mxu1 %v812_v1  ;;  %653 = vmatpush3.bf16.msra.mxu0 %v652_v31  ;;  %v661_v39 = vpack.c.bf16 %v270_v38, %v269_v37  ;;  %v272_v41 = vld [vmem:[#allocation6 + $0x48] sm:$0xff]  ;;  %v273_v43 = vld [vmem:[#allocation6 + $0x50] sm:$0xff]  ;;  %v274_v44 = vld [vmem:[#allocation6 + $0x58] sm:$0xff] }
  0x53   :  { %654 = vmatprep.subr.bf16.mxu0 %v812_v1  ;;  %v664_v42 = vpack.c.bf16 %v272_v41, %v271_v40  ;;  %v667_v45 = vpack.c.bf16 %v274_v44, %v273_v43  ;;  %v275_v46 = vld [vmem:[#allocation6 + $0x60] sm:$0xff]  ;;  %v276_v47 = vld [vmem:[#allocation6 + $0x68] sm:$0xff]  ;;  %v459_v49 = vld [vmem:[%s973_s2] ss:$0 sm:$0xff] }
  0x54   :  { %v670_v48 = vpack.c.bf16 %v276_v47, %v275_v46  ;;  %v277_v54 = vld [vmem:[#allocation6 + $0x70] sm:$0xff]  ;;  %v278_v55 = vld [vmem:[#allocation6 + $0x78] sm:$0xff]  ;;  %v357_v57 = vld [vmem:[#allocation7] sm:$0xff] }
  0x55   :  { %635 = vmatpush3.bf16.msra.mxu1 %v634_v12  ;;  %v673_v56 = vpack.c.bf16 %v278_v55, %v277_v54  ;;  %v358_v58 = vld [vmem:[#allocation7 + $0x8] sm:$0xff]  ;;  %v359_v59 = vld [vmem:[#allocation7 + $0x10] sm:$0xff]  ;;  %v360_v61 = vld [vmem:[#allocation7 + $0x18] sm:$0xff] }
  0x56   :  { %636 = vmatprep.subr.bf16.mxu1 %v812_v1  ;;  %656 = vmatpush3.bf16.msra.mxu0 %v655_v33  ;;  %v676_v60 = vpack.c.bf16 %v358_v58, %v357_v57  ;;  %v679_v62 = vpack.c.bf16 %v360_v61, %v359_v59  ;;  %v361_v63 = vld [vmem:[#allocation7 + $0x20] sm:$0xff]  ;;  %v362_v2 = vld [vmem:[#allocation7 + $0x28] sm:$0xff]  ;;  %v364_v4 = vld [vmem:[#allocation7 + $0x38] sm:$0xff] }
  0x57   :  { %657 = vmatprep.subr.bf16.mxu0 %v812_v1  ;;  %v682_v3 = vpack.c.bf16 %v362_v2, %v361_v63  ;;  %v365_v6 = vld [vmem:[#allocation7 + $0x40] sm:$0xff]  ;;  %v366_v7 = vld [vmem:[#allocation7 + $0x48] sm:$0xff]  ;;  %v367_v9 = vld [vmem:[#allocation7 + $0x50] sm:$0xff] }
  0x58   :  { %v688_v8 = vpack.c.bf16 %v366_v7, %v365_v6  ;;  %v368_v10 = vld [vmem:[#allocation7 + $0x58] sm:$0xff]  ;;  %v369_v12 = vld [vmem:[#allocation7 + $0x60] sm:$0xff]  ;;  %v370_v13 = vld [vmem:[#allocation7 + $0x68] sm:$0xff] }
  0x59   :  { %638 = vmatpush3.bf16.msra.mxu1 %v637_v15  ;;  %v691_v11 = vpack.c.bf16 %v368_v10, %v367_v9  ;;  %v694_v14 = vpack.c.bf16 %v370_v13, %v369_v12  ;;  %v461_v15 = vld [vmem:[%s975_s4] ss:$0 sm:$0xff]  ;;  %v371_v20 = vld [vmem:[#allocation7 + $0x70] sm:$0xff] }
  0x5a   :  { %639 = vmatprep.subr.bf16.mxu1 %v812_v1  ;;  %659 = vmatpush3.bf16.msra.mxu0 %v658_v36  ;;  %v462_v23 = vld [vmem:[%s977_s6] ss:$0 sm:$0xff] }
  0x5b   :  { %660 = vmatprep.subr.bf16.mxu0 %v812_v1 }
  0x5d   :  { %641 = vmatpush3.bf16.msra.mxu1 %v640_v18 }
  0x5e   :  { %642 = vmatprep.subr.bf16.mxu1 %v812_v1  ;;  %662 = vmatpush3.bf16.msra.mxu0 %v661_v39 }
  0x5f   :  { %663 = vmatprep.subr.bf16.mxu0 %v812_v1 }
  0x61   :  { %644 = vmatpush3.bf16.msra.mxu1 %v643_v21  ;;  %v372_v21 = vld [vmem:[#allocation7 + $0x78] sm:$0xff] }
  0x62   :  { %645 = vmatprep.subr.bf16.mxu1 %v812_v1  ;;  %665 = vmatpush3.bf16.msra.mxu0 %v664_v42  ;;  %v697_v22 = vpack.c.bf16 %v372_v21, %v371_v20 }
  0x63   :  { %666 = vmatprep.subr.bf16.mxu0 %v812_v1 }
  0x65   :  { %647 = vmatpush3.bf16.msra.mxu1 %v646_v24 }
  0x66   :  { %648 = vmatprep.subr.bf16.mxu1 %v812_v1  ;;  %668 = vmatpush3.bf16.msra.mxu0 %v667_v45 }
  0x67   :  { %669 = vmatprep.subr.bf16.mxu0 %v812_v1 }
  0x69   :  { %650 = vmatpush3.bf16.msra.mxu1 %v649_v27  ;;  %v463_v27 = vld [vmem:[%s979_s8] ss:$0 sm:$0xff] }
  0x6a   :  { %675 = vmatprep.subr.bf16.mxu1 %v812_v1  ;;  %671 = vmatpush3.bf16.msra.mxu0 %v670_v48 }
  0x6b   :  { %672 = vmatprep.subr.bf16.mxu0 %v812_v1 }
  0x6e   :  { %674 = vmatpush3.bf16.msra.mxu0 %v673_v56 }
 0x11f   :  { %v164_v50 = vpop.f32.mrb[0].mxu0 }
 0x120   :  { %v165_v51 = vadd.f32 %v459_v49, %v164_v50  ;;  %v521_v52 = vpop.f32.mrb[1].mxu0 }
 0x122   :  { %v168_v53 = vmax.f32 %v165_v51, 0.0 }
 0x124   :  { %555 = vmatmul.mubr.f32.vlgmr.msra.gmra.mrb[0].mxu1 %v168_v53 }
 0x125   :  { %624 = vmatprep.mubr.msk.f32.mxu1 %vm811_vm0, %v810_v0  ;;  %677 = vmatpush3.bf16.msra.mxu1 %v676_v60  ;;  %v363_v0 = vld [vmem:[#allocation7 + $0x30] sm:$0xff] }
 0x126   :  { %678 = vmatprep.subr.bf16.mxu1 %v812_v1  ;;  %v685_v5 = vpack.c.bf16 %v364_v4, %v363_v0 }
 0x129   :  { %680 = vmatpush3.bf16.msra.mxu1 %v679_v62 }
 0x12a   :  { %681 = vmatprep.subr.bf16.mxu1 %v812_v1 }
 0x12d   :  { %683 = vmatpush3.bf16.msra.mxu1 %v682_v3 }
 0x12e   :  { %684 = vmatprep.subr.bf16.mxu1 %v812_v1 }
 0x131   :  { %686 = vmatpush3.bf16.msra.mxu1 %v685_v5 }
 0x132   :  { %687 = vmatprep.subr.bf16.mxu1 %v812_v1 }
 0x135   :  { %689 = vmatpush3.bf16.msra.mxu1 %v688_v8 }
 0x136   :  { %690 = vmatprep.subr.bf16.mxu1 %v812_v1 }
 0x139   :  { %692 = vmatpush3.bf16.msra.mxu1 %v691_v11 }
 0x13a   :  { %693 = vmatprep.subr.bf16.mxu1 %v812_v1 }
 0x13d   :  { %695 = vmatpush3.bf16.msra.mxu1 %v694_v14 }
 0x13e   :  { %696 = vmatprep.subr.bf16.mxu1 %v812_v1 }
 0x141   :  { %698 = vmatpush3.bf16.msra.mxu1 %v697_v22 }
 0x1f7   :  { %v258_v16 = vpop.f32.mrb[0].mxu1 }
 0x1f8   :  { %v259_v17 = vadd.f32 %v461_v15, %v258_v16  ;;  %v556_v18 = vpop.f32.mrb[1].mxu1 }
 0x1fa   :  { %v262_v19 = vmax.f32 %v259_v17, 0.0 }
 0x1fc   :  { %590 = vmatmul.mubr.f32.vlgmr.msra.gmra.mrb[2].mxu0 %v262_v19 }
 0x2cf   :  { %v352_v24 = vpop.f32.mrb[2].mxu0 }
 0x2d0   :  { %v353_v25 = vadd.f32 %v462_v23, %v352_v24  ;;  %v591_v1 = vpop.f32.mrb[3].mxu0 }
 0x2d2   :  { %v356_v26 = vmax.f32 %v353_v25, 0.0 }
 0x2d4   :  { %625 = vmatmul.mubr.f32.vlgmr.msra.gmra.mrb[2].mxu1 %v356_v26 }
 0x3a7   :  { %v446_v28 = vpop.f32.mrb[2].mxu1 }
 0x3a8   :  { %v447_v29 = vadd.f32 %v463_v27, %v446_v28  ;;  %v626_v30 = vpop.f32.mrb[3].mxu1 }
 0x3aa   :  { %708 = vtanh.f32 %v447_v29 }
 0x3b4   :  { %v709_v31 = vpop.eup %708 }
 0x3b5   :  { %451 = vst [vmem:[%s980_s9] sm:$0xff] %v709_v31 }
 0x3b6   :  { %456 = vsyncpa [#allocation3], 1 }
 0x3b7   :  { %457 = vsyncpa [#allocation5], 1 }
 0x3b8   :  { %458 = vsyncpa [#allocation8], 1 }

</bundles_post_ra>
